<compile_context>
chip_gen: v5e
topology: v5e:2x2
jax: 0.10.0
libtpu: 0.0.40
codegen_flags: <defaults>
</compile_context>

<pallas_src>
import functools

import jax
import jax.numpy as jnp
from jax.experimental import pallas as pl
from jax.experimental.pallas import tpu as pltpu

SUBLANE = 8
BN_EPS = 1e-5


def _round_up(n, m):
    return ((n + m - 1) // m) * m


def _head_kernel(x_ref, w1_ref, c1_ref, w2_ref, c2_ref, w3_ref, b3_ref, o_ref):
    # ----- layer 1: Linear (eval BN folded into w1/c1) + ReLU; Dropout = id -----
    x = x_ref[...].astype(jnp.bfloat16)
    h1 = jnp.dot(x, w1_ref[...], preferred_element_type=jnp.float32)
    h1 = jnp.maximum(h1 + c1_ref[...], 0.0)

    # ----- layer 2: Linear (eval BN folded into w2/c2) + ReLU; Dropout = id -----
    h2 = jnp.dot(h1.astype(jnp.bfloat16), w2_ref[...],
                 preferred_element_type=jnp.float32)
    h2 = jnp.maximum(h2 + c2_ref[...], 0.0)

    # ----- layer 3: Linear + Sigmoid, stored at the natural (unpadded) width ----
    logits = jnp.dot(h2.astype(jnp.bfloat16), w3_ref[...],
                     preferred_element_type=jnp.float32)
    o_ref[...] = jax.nn.sigmoid(logits + b3_ref[...])


def fold_params(params, eps=BN_EPS):
    """Fold eval-mode BatchNorm1d into the preceding Linear and cast weights.

    Run ONCE per parameter set (hoisted out of the per-call jitted path):
      (x @ w + b) * s + t  ==  x @ (w * s) + (b * s + t)
    """
    (w1, b1, g1, be1, m1, v1,
     w2, b2, g2, be2, m2, v2,
     w3, b3) = params
    s1 = g1 * jax.lax.rsqrt(v1 + eps)
    t1 = be1 - m1 * s1
    s2 = g2 * jax.lax.rsqrt(v2 + eps)
    t2 = be2 - m2 * s2
    return (
        (w1 * s1[None, :]).astype(jnp.bfloat16),          # w1 (BN folded)
        (b1 * s1 + t1)[None, :].astype(jnp.float32),       # c1
        (w2 * s2[None, :]).astype(jnp.bfloat16),           # w2 (BN folded)
        (b2 * s2 + t2)[None, :].astype(jnp.float32),       # c2
        w3.astype(jnp.bfloat16),                           # w3 (unpadded)
        b3[None, :].astype(jnp.float32),                   # b3 (unpadded)
    )


@functools.partial(jax.jit, static_argnames=("tile_b",))
def head_forward(x, folded_params, *, tile_b=2048):
    """x: (B, ...) any trailing shape; flattened to (B, F) like PyTorch."""
    w1f, c1, w2f, c2, w3b, b3 = folded_params
    b = x.shape[0]
    x2d = x.reshape(b, -1)
    f = x2d.shape[1]
    h1n = w1f.shape[1]
    h2n = w2f.shape[1]
    window = w3b.shape[1]

    # Balanced batch tiling, tile a multiple of 8.  Guarantee >= 2 (even) grid
    # steps whenever the batch is large enough so the "parallel" batch axis can
    # shard across both v7x TensorCores.
    tile_b = _round_up(max(tile_b, SUBLANE), SUBLANE)
    num_tiles = pl.cdiv(b, tile_b)
    if b >= 2 * SUBLANE:
        num_tiles = max(num_tiles, 2)
    if num_tiles > 1 and num_tiles % 2:
        num_tiles += 1
    tile = _round_up(pl.cdiv(b, num_tiles), SUBLANE)
    num_tiles = pl.cdiv(b, tile)
    b_pad = num_tiles * tile

    if b_pad != b:
        x2d = jnp.pad(x2d, ((0, b_pad - b), (0, 0)))

    cost = pl.CostEstimate(
        flops=2 * b_pad * (f * h1n + h1n * h2n + h2n * window),
        transcendentals=b_pad * window,
        bytes_accessed=(x2d.size * x2d.dtype.itemsize
                        + (w1f.size + w2f.size + w3b.size) * 2
                        + (c1.size + c2.size + b3.size) * 4
                        + b_pad * window * 4),
    )

    out = pl.pallas_call(
        _head_kernel,
        out_shape=jax.ShapeDtypeStruct((b_pad, window), jnp.float32),
        grid_spec=pltpu.PrefetchScalarGridSpec(
            num_scalar_prefetch=0,
            grid=(num_tiles,),
            in_specs=[
                pl.BlockSpec((tile, f), lambda i: (i, 0)),      # x: batch-tiled
                pl.BlockSpec((f, h1n), lambda i: (0, 0)),       # w1, resident
                pl.BlockSpec((1, h1n), lambda i: (0, 0)),       # c1
                pl.BlockSpec((h1n, h2n), lambda i: (0, 0)),     # w2, resident
                pl.BlockSpec((1, h2n), lambda i: (0, 0)),       # c2
                pl.BlockSpec((h2n, window), lambda i: (0, 0)),  # w3 (unpadded)
                pl.BlockSpec((1, window), lambda i: (0, 0)),    # b3 (unpadded)
            ],
            out_specs=pl.BlockSpec((tile, window), lambda i: (i, 0)),
        ),
        compiler_params=pltpu.CompilerParams(
            dimension_semantics=("parallel",)),
        cost_estimate=cost,
    )(x2d, w1f, c1, w2f, c2, w3b, b3)

    if b_pad != b:
        out = out[:b]
    return out


def init_params(key, in_features, h1, h2, window):
    """Deterministic synthetic parameters (shapes per the module __init__)."""
    ks = jax.random.split(key, 10)

    def lin(kw, kb, fan_in, fan_out):
        bound = 1.0 / jnp.sqrt(fan_in)
        w = jax.random.uniform(kw, (fan_in, fan_out), jnp.float32, -bound, bound)
        b = jax.random.uniform(kb, (fan_out,), jnp.float32, -bound, bound)
        return w, b

    w1, b1 = lin(ks[0], ks[1], in_features, h1)
    w2, b2 = lin(ks[2], ks[3], h1, h2)
    w3, b3 = lin(ks[4], ks[5], h2, window)

    # BatchNorm params (non-trivial values exercise the folded affine path).
    g1 = 1.0 + 0.1 * jax.random.normal(ks[6], (h1,), jnp.float32)
    be1 = 0.1 * jax.random.normal(ks[7], (h1,), jnp.float32)
    m1 = jnp.zeros((h1,), jnp.float32)
    v1 = jnp.ones((h1,), jnp.float32)

    g2 = 1.0 + 0.1 * jax.random.normal(ks[8], (h2,), jnp.float32)
    be2 = 0.1 * jax.random.normal(ks[9], (h2,), jnp.float32)
    m2 = jnp.zeros((h2,), jnp.float32)
    v2 = jnp.ones((h2,), jnp.float32)

    return (w1, b1, g1, be1, m1, v1,
            w2, b2, g2, be2, m2, v2,
            w3, b3)


def _reference(x, params):
    """Pure-f32 reference of the same forward pass (eval-mode BN, no dropout)."""
    b = x.shape[0]
    x2d = x.reshape(b, -1).astype(jnp.float32)
    (w1, b1, g1, be1, m1, v1,
     w2, b2, g2, be2, m2, v2,
     w3, b3) = params
    h = x2d @ w1 + b1
    h = g1 * (h - m1) / jnp.sqrt(v1 + BN_EPS) + be1
    h = jnp.maximum(h, 0.0)
    h = h @ w2 + b2
    h = g2 * (h - m2) / jnp.sqrt(v2 + BN_EPS) + be2
    h = jnp.maximum(h, 0.0)
    return jax.nn.sigmoid(h @ w3 + b3)


if __name__ == "__main__":
    key = jax.random.PRNGKey(0)
    k_x, k_p, k_x2 = jax.random.split(key, 3)

    # Small shapes consistent with the module: window_size=7,
    # hidden sizes 128, input (B, window, feat) -> flattened to (B, 112).
    batch, window, feat = 2, 7, 16
    h1_size, h2_size = 128, 128

    params = init_params(k_p, window * feat, h1_size, h2_size, window)
    folded = jax.block_until_ready(fold_params(params))   # one-time, out of hot path

    x = jax.random.normal(k_x, (batch, window, feat), jnp.float32)
    out = jax.block_until_ready(head_forward(x, folded))
    ref = _reference(x, params)
    assert out.shape == (batch, window)
    # bf16 inputs/weights with f32 accumulation: allow bf16-level tolerance.
    assert jnp.allclose(out, ref, atol=2e-2, rtol=0.0), (
        float(jnp.max(jnp.abs(out - ref))))

    # Also exercise the multi-tile / batch-padding path (still small & fast).
    batch2 = 40
    x2 = jax.random.normal(k_x2, (batch2, window, feat), jnp.float32)
    out2 = jax.block_until_ready(head_forward(x2, folded))
    ref2 = _reference(x2, params)
    assert out2.shape == (batch2, window)
    assert jnp.allclose(out2, ref2, atol=2e-2, rtol=0.0), (
        float(jnp.max(jnp.abs(out2 - ref2))))

    print("KERNEL_OK")
</pallas_src>

<mosaic_0001>
module attributes {stable_mosaic.version = 11 : i64} {
  func.func @_head_kernel(%arg0: i32, %arg1: memref<8x112xf32, #tpu.memory_space<vmem>>, %arg2: memref<112x128xbf16, #tpu.memory_space<vmem>>, %arg3: memref<1x128xf32, #tpu.memory_space<vmem>>, %arg4: memref<128x128xbf16, #tpu.memory_space<vmem>>, %arg5: memref<1x128xf32, #tpu.memory_space<vmem>>, %arg6: memref<128x7xbf16, #tpu.memory_space<vmem>>, %arg7: memref<1x7xf32, #tpu.memory_space<vmem>>, %arg8: memref<8x7xf32, #tpu.memory_space<vmem>>) attributes {dimension_semantics = [#tpu.dimension_semantics<parallel>], iteration_bounds = array<i64: 1>, scalar_prefetch = 0 : i64, scratch_operands = 0 : i64, tpu.core_type = #tpu.core_type<tc>, window_params = [{transform_indices = @transform_0, window_bounds = array<i64: 8, 112>}, {pipeline_mode = #tpu.pipeline_mode<synchronous>, transform_indices = @transform_1, window_bounds = array<i64: 112, 128>}, {pipeline_mode = #tpu.pipeline_mode<synchronous>, transform_indices = @transform_2, window_bounds = array<i64: 1, 128>}, {pipeline_mode = #tpu.pipeline_mode<synchronous>, transform_indices = @transform_3, window_bounds = array<i64: 128, 128>}, {pipeline_mode = #tpu.pipeline_mode<synchronous>, transform_indices = @transform_4, window_bounds = array<i64: 1, 128>}, {pipeline_mode = #tpu.pipeline_mode<synchronous>, transform_indices = @transform_5, window_bounds = array<i64: 128, 7>}, {pipeline_mode = #tpu.pipeline_mode<synchronous>, transform_indices = @transform_6, window_bounds = array<i64: 1, 7>}, {transform_indices = @transform_7, window_bounds = array<i64: 8, 7>}]} {
    %c0 = arith.constant 0 : index
    %c0_0 = arith.constant 0 : index
    %0 = vector.load %arg1[%c0, %c0_0] : memref<8x112xf32, #tpu.memory_space<vmem>>, vector<8x112xf32>
    %1 = arith.truncf %0 : vector<8x112xf32> to vector<8x112xbf16>
    %c0_1 = arith.constant 0 : index
    %c0_2 = arith.constant 0 : index
    %2 = vector.load %arg2[%c0_1, %c0_2] : memref<112x128xbf16, #tpu.memory_space<vmem>>, vector<112x128xbf16>
    %cst = arith.constant dense<0.000000e+00> : vector<8x128xf32>
    %3 = tpu.matmul %1, %2, %cst {dimension_numbers = #tpu.dot_dimension_numbers<[1], [0], [0], [1], [0, 0, 1, 1], [], []>} : vector<8x112xbf16>, vector<112x128xbf16>, vector<8x128xf32> -> vector<8x128xf32>
    %c0_3 = arith.constant 0 : index
    %c0_4 = arith.constant 0 : index
    %4 = vector.load %arg3[%c0_3, %c0_4] : memref<1x128xf32, #tpu.memory_space<vmem>>, vector<1x128xf32>
    %5 = vector.broadcast %4 : vector<1x128xf32> to vector<8x128xf32>
    %6 = arith.addf %3, %5 : vector<8x128xf32>
    %cst_5 = arith.constant 0.000000e+00 : f32
    %7 = vector.broadcast %cst_5 : f32 to vector<8x128xf32>
    %8 = arith.maximumf %6, %7 : vector<8x128xf32>
    %9 = arith.truncf %8 : vector<8x128xf32> to vector<8x128xbf16>
    %c0_6 = arith.constant 0 : index
    %c0_7 = arith.constant 0 : index
    %10 = vector.load %arg4[%c0_6, %c0_7] : memref<128x128xbf16, #tpu.memory_space<vmem>>, vector<128x128xbf16>
    %cst_8 = arith.constant dense<0.000000e+00> : vector<8x128xf32>
    %11 = tpu.matmul %9, %10, %cst_8 {dimension_numbers = #tpu.dot_dimension_numbers<[1], [0], [0], [1], [0, 0, 1, 1], [], []>} : vector<8x128xbf16>, vector<128x128xbf16>, vector<8x128xf32> -> vector<8x128xf32>
    %c0_9 = arith.constant 0 : index
    %c0_10 = arith.constant 0 : index
    %12 = vector.load %arg5[%c0_9, %c0_10] : memref<1x128xf32, #tpu.memory_space<vmem>>, vector<1x128xf32>
    %13 = vector.broadcast %12 : vector<1x128xf32> to vector<8x128xf32>
    %14 = arith.addf %11, %13 : vector<8x128xf32>
    %cst_11 = arith.constant 0.000000e+00 : f32
    %15 = vector.broadcast %cst_11 : f32 to vector<8x128xf32>
    %16 = arith.maximumf %14, %15 : vector<8x128xf32>
    %17 = arith.truncf %16 : vector<8x128xf32> to vector<8x128xbf16>
    %c0_12 = arith.constant 0 : index
    %c0_13 = arith.constant 0 : index
    %18 = vector.load %arg6[%c0_12, %c0_13] : memref<128x7xbf16, #tpu.memory_space<vmem>>, vector<128x7xbf16>
    %cst_14 = arith.constant dense<0.000000e+00> : vector<8x7xf32>
    %19 = tpu.matmul %17, %18, %cst_14 {dimension_numbers = #tpu.dot_dimension_numbers<[1], [0], [0], [1], [0, 0, 1, 1], [], []>} : vector<8x128xbf16>, vector<128x7xbf16>, vector<8x7xf32> -> vector<8x7xf32>
    %c0_15 = arith.constant 0 : index
    %c0_16 = arith.constant 0 : index
    %20 = vector.load %arg7[%c0_15, %c0_16] : memref<1x7xf32, #tpu.memory_space<vmem>>, vector<1x7xf32>
    %21 = vector.broadcast %20 : vector<1x7xf32> to vector<8x7xf32>
    %22 = arith.addf %19, %21 : vector<8x7xf32>
    %23 = arith.negf %22 : vector<8x7xf32>
    %24 = math.exp %23 : vector<8x7xf32>
    %cst_17 = arith.constant 1.000000e+00 : f32
    %25 = vector.broadcast %cst_17 : f32 to vector<8x7xf32>
    %26 = arith.addf %25, %24 : vector<8x7xf32>
    %27 = arith.divf %25, %26 : vector<8x7xf32>
    %c0_18 = arith.constant 0 : index
    %c0_19 = arith.constant 0 : index
    %28 = vector.load %arg8[%c0_18, %c0_19] : memref<8x7xf32, #tpu.memory_space<vmem>>, vector<8x7xf32>
    tpu.vector_store %arg8[%c0_18, %c0_19], %27 {strides = array<i32>} : memref<8x7xf32, #tpu.memory_space<vmem>>, vector<8x7xf32>,
    return
  }
  func.func @transform_0(%arg0: i32) -> (i32, i32) {
    %c0_i32 = arith.constant 0 : i32
    %c0_i32_0 = arith.constant 0 : i32
    return %arg0, %c0_i32 : i32, i32
  }
  func.func @transform_1(%arg0: i32) -> (i32, i32) {
    %c0_i32 = arith.constant 0 : i32
    %c0_i32_0 = arith.constant 0 : i32
    %c0_i32_1 = arith.constant 0 : i32
    return %c0_i32, %c0_i32_0 : i32, i32
  }
  func.func @transform_2(%arg0: i32) -> (i32, i32) {
    %c0_i32 = arith.constant 0 : i32
    %c0_i32_0 = arith.constant 0 : i32
    %c0_i32_1 = arith.constant 0 : i32
    return %c0_i32, %c0_i32_0 : i32, i32
  }
  func.func @transform_3(%arg0: i32) -> (i32, i32) {
    %c0_i32 = arith.constant 0 : i32
    %c0_i32_0 = arith.constant 0 : i32
    %c0_i32_1 = arith.constant 0 : i32
    return %c0_i32, %c0_i32_0 : i32, i32
  }
  func.func @transform_4(%arg0: i32) -> (i32, i32) {
    %c0_i32 = arith.constant 0 : i32
    %c0_i32_0 = arith.constant 0 : i32
    %c0_i32_1 = arith.constant 0 : i32
    return %c0_i32, %c0_i32_0 : i32, i32
  }
  func.func @transform_5(%arg0: i32) -> (i32, i32) {
    %c0_i32 = arith.constant 0 : i32
    %c0_i32_0 = arith.constant 0 : i32
    %c0_i32_1 = arith.constant 0 : i32
    return %c0_i32, %c0_i32_0 : i32, i32
  }
  func.func @transform_6(%arg0: i32) -> (i32, i32) {
    %c0_i32 = arith.constant 0 : i32
    %c0_i32_0 = arith.constant 0 : i32
    %c0_i32_1 = arith.constant 0 : i32
    return %c0_i32, %c0_i32_0 : i32, i32
  }
  func.func @transform_7(%arg0: i32) -> (i32, i32) {
    %c0_i32 = arith.constant 0 : i32
    %c0_i32_0 = arith.constant 0 : i32
    return %arg0, %c0_i32 : i32, i32
  }
}

</mosaic_0001>

<bundles_post_ra>
// kernel: head_forward.1
= control target key start
LH: loop header
LB: loop body
LE: loop exit
PB: predicated region body
PF: predicated region fallthrough
CT: control target
= control target key end

     0   :  { %vm89_vm0 = vcmask 916480   ;;  %vm291_vm4 = vcmask 56320   ;;  %s545_s1 = inlined_call_operand.vmem [shape: bf16[112,128], index: 1, kind: input, shape index: {}]   ;;  %s546_s3 = inlined_call_operand.vmem [shape: bf16[128,128], index: 3, kind: input, shape index: {}]   ;;  %s547_s2 = inlined_call_operand.vmem [shape: f32[1,128], index: 2, kind: input, shape index: {}]   ;;  %s548_s0 = inlined_call_operand.vmem [shape: f32[8,112], index: 0, kind: input, shape index: {}]   ;;  %s549_s4 = inlined_call_operand.vmem [shape: f32[1,128], index: 4, kind: input, shape index: {}]   ;;  %s550_s5 = inlined_call_operand.vmem [shape: bf16[128,7], index: 5, kind: input, shape index: {}]   ;;  %s551_s6 = inlined_call_operand.vmem [shape: f32[1,7], index: 6, kind: input, shape index: {}]   ;;  %s552_s7 = inlined_call_operand.vmem [shape: f32[8,7], index: 7, kind: output, shape index: {}]  }
   0x1   :  { %v397_v0 = vld [vmem:[%s545_s1 + $0x30] sm:$0xff]  ;;  %v396_v1 = vld [vmem:[%s545_s1 + $0x28] sm:$0xff]  ;;  %v405_v2 = vld [vmem:[%s546_s3 + $0x38] sm:$0xff] }
   0x2   :  { %94 = vmatpush.bf16.msra.mxu0 %v397_v0  ;;  %176 = vmatpush.bf16.msra.mxu1 %v405_v2  ;;  %v404_v3 = vld [vmem:[%s546_s3 + $0x30] sm:$0xff]  ;;  %v395_v4 = vld [vmem:[%s545_s1 + $0x20] sm:$0xff]  ;;  %v403_v5 = vld [vmem:[%s546_s3 + $0x28] sm:$0xff] }
   0x3   :  { %v394_v6 = vld [vmem:[%s545_s1 + $0x18] sm:$0xff]  ;;  %v402_v7 = vld [vmem:[%s546_s3 + $0x20] sm:$0xff]  ;;  %v393_v8 = vld [vmem:[%s545_s1 + $0x10] sm:$0xff] }
   0x4   :  { %v401_v9 = vld [vmem:[%s546_s3 + $0x18] sm:$0xff]  ;;  %v392_v10 = vld [vmem:[%s545_s1 + $0x8] sm:$0xff]  ;;  %v400_v11 = vld [vmem:[%s546_s3 + $0x10] sm:$0xff] }
   0x5   :  { %v391_v12 = vld [vmem:[%s545_s1] sm:$0xff]  ;;  %v399_v15 = vld [vmem:[%s546_s3 + $0x8] sm:$0xff]  ;;  %v413_v17 = vld [vmem:[%s550_s5 + $0x38] sm:$0xff] }
   0x6   :  { %95 = vmatpush.bf16.msra.mxu0 %v396_v1  ;;  %177 = vmatpush.bf16.msra.mxu1 %v404_v3  ;;  %v27_v13 = vld [vmem:[%s548_s0] sm:$0xff]  ;;  %v412_v18 = vld [vmem:[%s550_s5 + $0x30] sm:$0xff]  ;;  %v411_v19 = vld [vmem:[%s550_s5 + $0x28] sm:$0xff] }
   0x7   :  { %v28_v14 = vpack.c.bf16 %v27_v13, %v27_v13  ;;  %v398_v16 = vld [vmem:[%s546_s3] sm:$0xff]  ;;  %259 = vmatpush.bf16.msra.mxu2 %v413_v17  ;;  %v409_v21 = vld [vmem:[%s550_s5 + $0x18] sm:$0xff]  ;;  %v408_v22 = vld [vmem:[%s550_s5 + $0x10] sm:$0xff] }
   0x8   :  { %v410_v20 = vld [vmem:[%s550_s5 + $0x20] sm:$0xff]  ;;  %v407_v29 = vld [vmem:[%s550_s5 + $0x8] sm:$0xff] }
   0x9   :  { %v414_v23 = vld [vmem:[%s547_s2] ss:$0 sm:$0xff] }
   0xa   :  { %96 = vmatpush.bf16.msra.mxu0 %v395_v4  ;;  %178 = vmatpush.bf16.msra.mxu1 %v403_v5  ;;  %v406_v30 = vld [vmem:[%s550_s5] sm:$0xff] }
   0xb   :  { %260 = vmatpush.bf16.msra.mxu2 %v412_v18  ;;  %v415_v31 = vld [vmem:[%s549_s4] ss:$0 sm:$0xff] }
   0xc   :  { %v416_v37 = vld [vmem:[%s551_s6] ss:$0 sm:$0xff] }
   0xe   :  { %97 = vmatpush.bf16.msra.mxu0 %v394_v6  ;;  %179 = vmatpush.bf16.msra.mxu1 %v402_v7 }
   0xf   :  { %261 = vmatpush.bf16.msra.mxu2 %v411_v19 }
  0x12   :  { %98 = vmatpush.bf16.msra.mxu0 %v393_v8  ;;  %180 = vmatpush.bf16.msra.mxu1 %v401_v9 }
  0x13   :  { %262 = vmatpush.bf16.msra.mxu2 %v410_v20 }
  0x16   :  { %99 = vmatpush.bf16.msra.mxu0 %v392_v10  ;;  %181 = vmatpush.bf16.msra.mxu1 %v400_v11 }
  0x17   :  { %263 = vmatpush.bf16.msra.mxu2 %v409_v21 }
  0x1a   :  { %100 = vmatpush.bf16.msra.mxu0 %v391_v12  ;;  %182 = vmatpush.bf16.msra.mxu1 %v399_v15 }
  0x1b   :  { %264 = vmatpush.bf16.msra.mxu2 %v408_v22 }
  0x1d   :  { %325 = vmatmul.msk.bf16.vlgmr.msra.gmra.mxu0 %vm89_vm0, %v28_v14 }
  0x1e   :  { %183 = vmatpush.bf16.msra.mxu1 %v398_v16 }
  0x1f   :  { %265 = vmatpush.bf16.msra.mxu2 %v407_v29 }
  0x23   :  { %266 = vmatpush.bf16.msra.mxu2 %v406_v30 }
  0x9a   :  { %v102_v24 = vpop.f32.mrf.mxu0 }
  0x9b   :  { %v103_v25 = vadd.f32 %v414_v23, %v102_v24 }
  0x9d   :  { %v106_v26 = vmax.f32 %v103_v25, 0.0 }
  0x9f   :  { %v107_v27 = vpack.c.bf16 %v106_v26, %v106_v26 }
  0xa1   :  { %184 = vmatmul.bf16.vlgmr.msra.gmra.mxu1 %v107_v27 }
  0xa2   :  { %v104_v28 = vpop.f32.mrf.mxu0 }
 0x11e   :  { %v185_v32 = vpop.f32.mrf.mxu1 }
 0x11f   :  { %v186_v33 = vadd.f32 %v415_v31, %v185_v32 }
 0x121   :  { %v189_v34 = vmax.f32 %v186_v33, 0.0 }
 0x123   :  { %v190_v35 = vpack.c.bf16 %v189_v34, %v189_v34 }
 0x125   :  { %267 = vmatmul.bf16.vlgmr.msra.gmra.mxu2 %v190_v35 }
 0x126   :  { %v187_v36 = vpop.f32.mrf.mxu1 }
 0x1a8   :  { %v268_v38 = vpop.f32.mrf.mxu2 }
 0x1a9   :  { %v269_v39 = vadd.f32 %v416_v37, %v268_v38 }
 0x1ab   :  { %v390_v40 = vmul.f32 -1.442695, %v269_v39 }
 0x1ad   :  { %417 = vpow2.f32 %v390_v40 }
 0x1b0   :  { %v270_v41 = vpop.f32.mrf.mxu2 }
 0x1b3   :  { %v418_v42 = vpop.eup %417 }
 0x1b4   :  { %v275_v43 = vadd.f32 1.0, %v418_v42 }
 0x1b6   :  { %419 = vrcp.f32 %v275_v43  ;;  %v287_v47 = vand.u32 2147483648, %v275_v43  ;;  %v285_v49 = vand.u32 2147483647, %v275_v43  ;;  %vm281_vm2 = vweird.f32 %v275_v43 }
 0x1b8   :  { %v288_v51 = vor.u32 1.1754944e-38, %v287_v47  ;;  %vm286_vm5 = vcmp.eq.f32.partialorder %v285_v49, 8.507059e+37 }
 0x1bc   :  { %v420_v44 = vpop.eup %419 }
 0x1bd   :  { %v277_v45 = vmul.f32 %v420_v44, %v275_v43  ;;  %vm282_vm1 = vweird.f32 %v420_v44 }
 0x1be   :  { %vm283_vm3 = vmor %vm281_vm2, %vm282_vm1 }
 0x1bf   :  { %v278_v46 = vsub.f32 1.0, %v277_v45 }
 0x1c1   :  { %v279_v48 = vmul.f32 %v420_v44, %v278_v46 }
 0x1c3   :  { %v280_v50 = vadd.f32 %v420_v44, %v279_v48 }
 0x1c5   :  { %v284_v52 = vsel %vm283_vm3, %v420_v44, %v280_v50 }
 0x1c6   :  { %v289_v53 = vsel %vm286_vm5, %v288_v51, %v284_v52 }
 0x1c7   :  { %292 = vst.msk [vmem:[%s552_s7] sm:$0xff] %vm291_vm4, %v289_v53 }

</bundles_post_ra>
